<compile_context>
chip_gen: v5e
topology: v5e:2x2
jax: 0.10.0
libtpu: 0.0.40
codegen_flags: <defaults>
</compile_context>

<pallas_src>
import functools
import math

import jax
import jax.numpy as jnp
from jax.experimental import pallas as pl
from jax.experimental.pallas import tpu as pltpu

EPS = 1e-5
EXPANSION = 4  # Bottleneck block expansion


# ---------------------------------------------------------------------------
# Pallas kernels
# ---------------------------------------------------------------------------
def _fused_matmul_kernel(*refs, apply_relu, has_residual):
    if has_residual:
        x_ref, w_ref, b_ref, r_ref, o_ref, acc_ref = refs
    else:
        x_ref, w_ref, b_ref, o_ref, acc_ref = refs
        r_ref = None
    k = pl.program_id(2)

    @pl.when(k == 0)
    def _():
        acc_ref[...] = jnp.zeros_like(acc_ref)

    acc_ref[...] += jnp.dot(x_ref[...], w_ref[...],
                            preferred_element_type=jnp.float32)

    @pl.when(k == pl.num_programs(2) - 1)
    def _():
        y = acc_ref[...] + b_ref[...]              # BN shift / fc bias (f32)
        if r_ref is not None:
            y = y + r_ref[...].astype(jnp.float32)  # residual add in f32
        if apply_relu:
            y = jnp.maximum(y, 0.0)
        o_ref[...] = y.astype(o_ref.dtype)


def fused_matmul(x, w, shift, residual=None, relu=False,
                 out_dtype=jnp.bfloat16):
    """Tiled (M,K)@(K,N) + shift (+ residual) (+ ReLU) in one Pallas kernel."""
    M, K = x.shape
    Kw, N = w.shape
    assert K == Kw
    has_res = residual is not None

    # --- tile sizes --------------------------------------------------------
    # Lane-dense N tiles; K tiles in multiples of 128 when K allows, else a
    # single full-K block (allowed: block dim == full array dim).
    tn = 128 if (N % 128 == 0) else N
    if K % 256 == 0:
        tk = 256
    elif K % 128 == 0:
        tk = 128
    else:
        tk = K
    tm = 128 if M >= 128 else ((M + 7) // 8) * 8
    Mp = ((M + tm - 1) // tm) * tm

    # --- operand prep (bf16 MXU feeds, f32 epilogue constants) -------------
    x = x.astype(jnp.bfloat16)
    w = w.astype(jnp.bfloat16)
    shift = shift.reshape(1, N).astype(jnp.float32)
    if Mp != M:
        x = jnp.pad(x, ((0, Mp - M), (0, 0)))

    inputs = [x, w, shift]
    in_specs = [
        pl.BlockSpec((tm, tk), lambda i, j, k: (i, k)),
        pl.BlockSpec((tk, tn), lambda i, j, k: (k, j)),
        pl.BlockSpec((1, tn), lambda i, j, k: (0, j)),
    ]
    if has_res:
        r = residual.astype(jnp.bfloat16)
        if Mp != M:
            r = jnp.pad(r, ((0, Mp - M), (0, 0)))
        inputs.append(r)
        in_specs.append(pl.BlockSpec((tm, tn), lambda i, j, k: (i, j)))

    grid = (Mp // tm, N // tn, K // tk)

    # VMEM budget derived from tiles (2x for double buffering) + headroom;
    # capped at 48 MiB so it is valid on v7x's 64 MiB as well as v5e/v6e.
    out_bytes = jnp.dtype(out_dtype).itemsize
    vmem_bytes = 2 * (tm * tk * 2 + tk * tn * 2 + tn * 4 + tm * tn * out_bytes)
    if has_res:
        vmem_bytes += 2 * tm * tn * 2
    vmem_bytes += tm * tn * 4                       # f32 accumulator
    vmem_limit = min(48 * 1024 * 1024, max(vmem_bytes + (4 << 20), 16 << 20))

    kernel = functools.partial(
        _fused_matmul_kernel, apply_relu=relu, has_residual=has_res)
    y = pl.pallas_call(
        kernel,
        grid=grid,
        in_specs=in_specs,
        out_specs=pl.BlockSpec((tm, tn), lambda i, j, k: (i, j)),
        out_shape=jax.ShapeDtypeStruct((Mp, N), out_dtype),
        scratch_shapes=[pltpu.VMEM((tm, tn), jnp.float32)],
        compiler_params=pltpu.CompilerParams(
            dimension_semantics=("parallel", "parallel", "arbitrary"),
            vmem_limit_bytes=vmem_limit),
    )(*inputs)
    return y[:M] if Mp != M else y


def _avgpool_kernel(x_ref, o_ref):
    o_ref[...] = jnp.mean(x_ref[...].astype(jnp.float32), axis=1)


def global_avgpool(x_nhwc):
    """AvgPool2d over the full spatial extent -> (B, C), f32."""
    # TODO(synk): fuse this reduction into the epilogue of the last
    # bottleneck's conv3 kernel to avoid one HBM round trip of the largest
    # late-stage activation.
    B, H, W, C = x_nhwc.shape
    x = x_nhwc.reshape(B, H * W, C)
    return pl.pallas_call(
        _avgpool_kernel,
        grid=(1,),
        in_specs=[pl.BlockSpec((B, H * W, C), lambda i: (0, 0, 0))],
        out_specs=pl.BlockSpec((B, C), lambda i: (0, 0)),
        out_shape=jax.ShapeDtypeStruct((B, C), jnp.float32),
    )(x)


# ---------------------------------------------------------------------------
# Conv wrappers (glue: slicing / im2col / reshape; compute goes to the kernel)
# ---------------------------------------------------------------------------
def conv1x1(x, w, shift, stride=1, relu=False, residual=None):
    if stride > 1:
        # TODO(synk): express the stride in the consuming kernel's index_map
        # instead of a wrapper-side strided-slice copy.
        x = x[:, ::stride, ::stride, :]
    B, H, W, C = x.shape
    res = residual.reshape(B * H * W, -1) if residual is not None else None
    y = fused_matmul(x.reshape(B * H * W, C), w.reshape(C, -1),
                     shift, residual=res, relu=relu)
    return y.reshape(B, H, W, -1)


def _im2col_3x3(x, stride):
    B, H, W, C = x.shape
    Ho = (H - 3) // stride + 1
    Wo = (W - 3) // stride + 1
    cols = []
    for di in range(3):
        for dj in range(3):
            cols.append(x[:, di:di + stride * (Ho - 1) + 1:stride,
                            dj:dj + stride * (Wo - 1) + 1:stride, :])
    return jnp.concatenate(cols, axis=-1), Ho, Wo  # (B, Ho, Wo, 9*C), bf16


def conv3x3(x, w, shift, stride=1, relu=False, residual=None):
    # TODO(synk): replace the HBM-materialized im2col with 9 shifted matmuls
    # accumulated inside the kernel (extra grid axis); for now the concat is
    # bf16 and the K axis is tiled so it is streamed, never fully resident.
    cols, Ho, Wo = _im2col_3x3(x.astype(jnp.bfloat16), stride)
    B = x.shape[0]
    Cout = w.shape[-1]
    res = residual.reshape(B * Ho * Wo, -1) if residual is not None else None
    y = fused_matmul(cols.reshape(B * Ho * Wo, -1), w.reshape(-1, Cout),
                     shift, residual=res, relu=relu)
    return y.reshape(B, Ho, Wo, Cout)


# ---------------------------------------------------------------------------
# Parameter construction (deterministic, mirrors BagNet.__init__)
# BN scale is folded into the preceding conv's weight columns; the additive
# shift (beta - mean*scale) is kept as the kernel epilogue bias.
# ---------------------------------------------------------------------------
def _bn_fold(c):
    gamma = jnp.ones((c,), jnp.float32)
    beta = jnp.zeros((c,), jnp.float32)
    mean = jnp.zeros((c,), jnp.float32)
    var = jnp.ones((c,), jnp.float32)
    scale = gamma / jnp.sqrt(var + EPS)
    return scale, beta - mean * scale


def _conv_init(key, kh, kw, cin, cout):
    n = kh * kw * cout
    return jax.random.normal(key, (kh, kw, cin, cout), jnp.float32) * math.sqrt(2.0 / n)


def _conv_bn(key, kh, kw, cin, cout):
    w = _conv_init(key, kh, kw, cin, cout)
    scale, shift = _bn_fold(cout)
    return w * scale[None, None, None, :], shift


def build_params(key, layers, strides, kernel3, num_classes):
    ki = iter(jax.random.split(key, 64))
    conv1 = _conv_init(next(ki), 1, 1, 3, 64)                   # no BN after conv1
    conv2, bn1_shift = _conv_bn(next(ki), 3, 3, 64, 64)
    params = {'conv1': conv1, 'conv2': conv2, 'bn1_shift': bn1_shift,
              'layers': [], 'num_classes': num_classes}
    inplanes = 64
    for planes, nblocks, stride, k3 in zip((64, 128, 256, 512),
                                           layers, strides, kernel3):
        blocks = []
        for bi in range(nblocks):
            s = stride if bi == 0 else 1
            kernel = 3 if k3 > bi else 1
            w1, b1 = _conv_bn(next(ki), 1, 1, inplanes, planes)
            w2, b2 = _conv_bn(next(ki), kernel, kernel, planes, planes)
            w3, b3 = _conv_bn(next(ki), 1, 1, planes, planes * EXPANSION)
            blk = {'kernel': kernel, 'stride': s,
                   'w1': w1, 'b1': b1, 'w2': w2, 'b2': b2, 'w3': w3, 'b3': b3}
            if bi == 0 and (s != 1 or inplanes != planes * EXPANSION):
                wd, bd = _conv_bn(next(ki), 1, 1, inplanes, planes * EXPANSION)
                blk['wd'] = wd
                blk['bd'] = bd
            blocks.append(blk)
            inplanes = planes * EXPANSION
        params['layers'].append(blocks)
    fin = 512 * EXPANSION
    bound = 1.0 / math.sqrt(fin)
    fc_w = jax.random.uniform(next(ki), (fin, num_classes),
                              jnp.float32, -bound, bound)
    fc_b = jax.random.uniform(next(ki), (num_classes,),
                              jnp.float32, -bound, bound)
    # Pad the fc output to 128 lanes so the final store is lane-dense;
    # padded logit columns are zero and sliced off after the kernel.
    n_pad = ((num_classes + 127) // 128) * 128
    params['fc_w'] = jnp.pad(fc_w, ((0, 0), (0, n_pad - num_classes)))
    params['fc_b'] = jnp.pad(fc_b, ((0, n_pad - num_classes),))
    return params


# ---------------------------------------------------------------------------
# Forward pass
# ---------------------------------------------------------------------------
def bottleneck_forward(x, blk):
    h = conv1x1(x, blk['w1'], blk['b1'], relu=True)
    if blk['kernel'] == 3:
        h = conv3x3(h, blk['w2'], blk['b2'], stride=blk['stride'], relu=True)
    else:
        h = conv1x1(h, blk['w2'], blk['b2'], stride=blk['stride'], relu=True)
    if 'wd' in blk:
        residual = conv1x1(x, blk['wd'], blk['bd'],
                           stride=blk['stride'], relu=False)
    else:
        residual = x
    # BagNet residual crop: residual[:, :, :-diff, :-diff] in NCHW.
    if residual.shape[1] != h.shape[1] or residual.shape[2] != h.shape[2]:
        dh = residual.shape[1] - h.shape[1]
        dw = residual.shape[2] - h.shape[2]
        assert dh == dw, "reference crop assumes square spatial dims"
        residual = residual[:, :-dh, :-dw, :]
    # conv3 + bn3 + residual add + relu, all fused in one tiled kernel call.
    return conv1x1(h, blk['w3'], blk['b3'], relu=True, residual=residual)


def bagnet_forward(params, x_nchw, avg_pool=True):
    x = jnp.transpose(x_nchw, (0, 2, 3, 1)).astype(jnp.bfloat16)  # NCHW -> NHWC
    # conv1 (1x1, 3->64, bias-free, no BN/ReLU) folded into conv2's 3x3
    # kernel: exact linear composition, removes a full-resolution HBM round
    # trip and the K=3 MXU-starved matmul.  bn1 scale is already inside conv2.
    w_eff = jnp.einsum('cm,hwmo->hwco', params['conv1'][0, 0], params['conv2'])
    x = conv3x3(x, w_eff, params['bn1_shift'], stride=1, relu=True)

    for blocks in params['layers']:
        for blk in blocks:
            x = bottleneck_forward(x, blk)

    nc = params['num_classes']
    if avg_pool:
        pooled = global_avgpool(x)                                  # (B, 2048) f32
        logits = fused_matmul(pooled, params['fc_w'], params['fc_b'],
                              relu=False, out_dtype=jnp.float32)
        return logits[:, :nc]                                       # (B, num_classes)
    else:
        B, H, W, C = x.shape
        y = fused_matmul(x.reshape(B * H * W, C), params['fc_w'],
                         params['fc_b'], relu=False, out_dtype=jnp.float32)
        return y.reshape(B, H, W, -1)[..., :nc]


# ---------------------------------------------------------------------------
if __name__ == "__main__":
    # Small BagNet configuration (Bottleneck block, expansion 4):
    layers = [1, 1, 1, 1]
    strides = [1, 2, 2, 2]
    kernel3 = [1, 1, 0, 0]   # bagnet9-style receptive field
    num_classes = 10

    key = jax.random.PRNGKey(0)
    pkey, xkey = jax.random.split(key)
    params = build_params(pkey, layers, strides, kernel3, num_classes)
    x = jax.random.normal(xkey, (2, 3, 16, 16), jnp.float32)  # NCHW input

    out = bagnet_forward(params, x, avg_pool=True)
    out = jax.block_until_ready(out)
    assert out.shape == (2, num_classes), out.shape
    assert bool(jnp.all(jnp.isfinite(out)))
    print("KERNEL_OK")
</pallas_src>

<mosaic_0001>
module attributes {stable_mosaic.version = 11 : i64} {
  func.func @_fused_matmul_kernel(%arg0: i32, %arg1: i32, %arg2: i32, %arg3: memref<128x27xbf16, #tpu.memory_space<vmem>>, %arg4: memref<27x64xbf16, #tpu.memory_space<vmem>>, %arg5: memref<1x64xf32, #tpu.memory_space<vmem>>, %arg6: memref<128x64xbf16, #tpu.memory_space<vmem>>, %arg7: memref<128x64xf32, #tpu.memory_space<vmem>>) attributes {dimension_semantics = [#tpu.dimension_semantics<parallel>, #tpu.dimension_semantics<parallel>, #tpu.dimension_semantics<arbitrary>], iteration_bounds = array<i64: 4, 1, 1>, scalar_prefetch = 0 : i64, scratch_operands = 1 : i64, tpu.core_type = #tpu.core_type<tc>, window_params = [{transform_indices = @transform_0, window_bounds = array<i64: 128, 27>}, {transform_indices = @transform_1, window_bounds = array<i64: 27, 64>}, {transform_indices = @transform_2, window_bounds = array<i64: 1, 64>}, {transform_indices = @transform_3, window_bounds = array<i64: 128, 64>}]} {
    %c0_i32 = arith.constant 0 : i32
    %0 = arith.cmpi eq, %arg2, %c0_i32 : i32
    %1 = arith.extui %0 : i1 to i32
    %c0_i32_0 = arith.constant 0 : i32
    %2 = arith.cmpi ne, %1, %c0_i32_0 : i32
    scf.if %2 {
      %cst_10 = arith.constant 0.000000e+00 : f32
      %12 = vector.broadcast %cst_10 : f32 to vector<128x64xf32>
      %c0_11 = arith.constant 0 : index
      %c0_12 = arith.constant 0 : index
      %13 = vector.load %arg7[%c0_11, %c0_12] : memref<128x64xf32, #tpu.memory_space<vmem>>, vector<128x64xf32>
      tpu.vector_store %arg7[%c0_11, %c0_12], %12 {strides = array<i32>} : memref<128x64xf32, #tpu.memory_space<vmem>>, vector<128x64xf32>,
    } else {
    }
    %c0 = arith.constant 0 : index
    %c0_1 = arith.constant 0 : index
    %3 = vector.load %arg7[%c0, %c0_1] : memref<128x64xf32, #tpu.memory_space<vmem>>, vector<128x64xf32>
    %c0_2 = arith.constant 0 : index
    %c0_3 = arith.constant 0 : index
    %4 = vector.load %arg3[%c0_2, %c0_3] : memref<128x27xbf16, #tpu.memory_space<vmem>>, vector<128x27xbf16>
    %c0_4 = arith.constant 0 : index
    %c0_5 = arith.constant 0 : index
    %5 = vector.load %arg4[%c0_4, %c0_5] : memref<27x64xbf16, #tpu.memory_space<vmem>>, vector<27x64xbf16>
    %cst = arith.constant dense<0.000000e+00> : vector<128x64xf32>
    %6 = tpu.matmul %4, %5, %cst {dimension_numbers = #tpu.dot_dimension_numbers<[1], [0], [0], [1], [0, 0, 1, 1], [], []>} : vector<128x27xbf16>, vector<27x64xbf16>, vector<128x64xf32> -> vector<128x64xf32>
    %7 = arith.addf %3, %6 : vector<128x64xf32>
    %c0_6 = arith.constant 0 : index
    %c0_7 = arith.constant 0 : index
    %8 = vector.load %arg7[%c0_6, %c0_7] : memref<128x64xf32, #tpu.memory_space<vmem>>, vector<128x64xf32>
    tpu.vector_store %arg7[%c0_6, %c0_7], %7 {strides = array<i32>} : memref<128x64xf32, #tpu.memory_space<vmem>>, vector<128x64xf32>,
    %c0_i32_8 = arith.constant 0 : i32
    %9 = arith.cmpi eq, %arg2, %c0_i32_8 : i32
    %10 = arith.extui %9 : i1 to i32
    %c0_i32_9 = arith.constant 0 : i32
    %11 = arith.cmpi ne, %10, %c0_i32_9 : i32
    scf.if %11 {
      %c0_10 = arith.constant 0 : index
      %c0_11 = arith.constant 0 : index
      %12 = vector.load %arg7[%c0_10, %c0_11] : memref<128x64xf32, #tpu.memory_space<vmem>>, vector<128x64xf32>
      %c0_12 = arith.constant 0 : index
      %c0_13 = arith.constant 0 : index
      %13 = vector.load %arg5[%c0_12, %c0_13] : memref<1x64xf32, #tpu.memory_space<vmem>>, vector<1x64xf32>
      %14 = vector.broadcast %13 : vector<1x64xf32> to vector<128x64xf32>
      %15 = arith.addf %12, %14 : vector<128x64xf32>
      %cst_14 = arith.constant 0.000000e+00 : f32
      %16 = vector.broadcast %cst_14 : f32 to vector<128x64xf32>
      %17 = arith.maximumf %15, %16 : vector<128x64xf32>
      %18 = arith.truncf %17 : vector<128x64xf32> to vector<128x64xbf16>
      %c0_15 = arith.constant 0 : index
      %c0_16 = arith.constant 0 : index
      %19 = vector.load %arg6[%c0_15, %c0_16] : memref<128x64xbf16, #tpu.memory_space<vmem>>, vector<128x64xbf16>
      tpu.vector_store %arg6[%c0_15, %c0_16], %18 {strides = array<i32>} : memref<128x64xbf16, #tpu.memory_space<vmem>>, vector<128x64xbf16>,
    } else {
    }
    return
  }
  func.func @transform_0(%arg0: i32, %arg1: i32, %arg2: i32) -> (i32, i32) {
    %c0_i32 = arith.constant 0 : i32
    return %arg0, %arg2 : i32, i32
  }
  func.func @transform_1(%arg0: i32, %arg1: i32, %arg2: i32) -> (i32, i32) {
    %c0_i32 = arith.constant 0 : i32
    return %arg2, %arg1 : i32, i32
  }
  func.func @transform_2(%arg0: i32, %arg1: i32, %arg2: i32) -> (i32, i32) {
    %c0_i32 = arith.constant 0 : i32
    %c0_i32_0 = arith.constant 0 : i32
    return %c0_i32, %arg1 : i32, i32
  }
  func.func @transform_3(%arg0: i32, %arg1: i32, %arg2: i32) -> (i32, i32) {
    %c0_i32 = arith.constant 0 : i32
    return %arg0, %arg1 : i32, i32
  }
}

</mosaic_0001>

<bundles_post_ra>
// kernel: tpu_custom_call.1
= control target key start
LH: loop header
LB: loop body
LE: loop exit
PB: predicated region body
PF: predicated region fallthrough
CT: control target
= control target key end

     0   :  { %s831_s12 = smov 0   ;;  %s833_s13 = smov 0   ;;  %s975_s0 = inlined_call_operand.vmem [shape: bf16[512,27], index: 0, kind: input, shape index: {}]   ;;  %s976_s1 = inlined_call_operand.vmem [shape: bf16[27,64], index: 1, kind: input, shape index: {}]   ;;  %s977_s2 = inlined_call_operand.vmem [shape: f32[1,64], index: 2, kind: input, shape index: {}]   ;;  %s978_s3 = inlined_call_operand.vmem [shape: bf16[512,64], index: 3, kind: output, shape index: {}]  }
   0x1   :  { %s835_s14 = smov 0  }
   0x2 LB: > { %s32_s15 = sadd.s32 1, %s803_s13  ;;  %p687_p0 = scmp.ge.s32.totalorder %s807_s14, 1  ;;  %s807_s14 = sphi %s835_s14, %s13_s14   ;;  %s803_s13 = sphi %s833_s13, %s980_s13   ;;  %s799_s12 = sphi %s831_s12, %s979_s12  }
   0x3   : > { %p34_p1 = scmp.ge.s32.totalorder %s32_s15, 4  ;;  %p188_p2 = scmp.lt.s32.totalorder %s807_s14, 5 }
   0x5   : > { %s982_s15 = smov (%p34_p1, %s32_s15), 0  ;;  %p189_p3 = pnand %p687_p0, %p188_p2 }
   0x6   : > { %s688_s20 = sshll.u32 (!%p189_p3), %s799_s12, 4 }
   0x7   : > { %192 = sbr.rel (%p189_p3) target bundleno = 203 (0xcb), region = 32  ;;  %p230_p4 = scmp.lt.s32.totalorder (!%p189_p3), %s688_s20, 63 }
   0xc   : > { %v730_v0 = vld [vmem:[%s976_s1 + $0x8] sm:$0xf]  ;;  %v751_v1 = vld [vmem:[%s976_s1 + $0x8] sm:$0x30]  ;;  %vm393_vm0 = vcmask 1044480   ;;  %vm394_vm1 = vcmask 1045504  }
   0xd   : > { %v731_v2 = vor.u32 %v751_v1, %v730_v0  ;;  %vm264_vm2 = vcmask 523264   ;;  %v809_v3 = vmov 65535   ;;  %v810_v6 = vmov 0.0   ;;  %s984_s20 = smov (!%p230_p4, %s688_s20), 63  ;;  %v750_v8 = vld [vmem:[%s976_s1] sm:$0xff] }
   0xe   : > { %v395_v4 = vsel %vm393_vm0, 4294967295, %v809_v3  ;;  %265 = vst.msk [vmem:[#allocation2] sm:$0xff] %vm264_vm2, %v810_v6  ;;  %s689_s23 = sshll.u32 %s984_s20, 2  ;;  %vm368_vm3 = vcmask 220160   ;;  %v895_v27 = vld [vmem:[%s977_s2] ss:$0 sm:$0xff] }
   0xf   : > { %v396_v5 = vsel %vm394_vm1, %v395_v4, 0  ;;  %266 = vst.msk [vmem:[#allocation2 + $0x8] sm:$0xff] %vm264_vm2, %v810_v6  ;;  %s236_s26 = scalar_lea.vmem %s975_s0, %s689_s23  ;;  %s908_s4 = scalar_lea.vmem %s978_s3, %s689_s23  ;;  %vm553_vm4 = vcmask 519168  }
  0x10   : > { %v398_v7 = vand.u32 %v731_v2, %v396_v5  ;;  %267 = vst.msk [vmem:[#allocation2 + $0x10] sm:$0xff] %vm264_vm2, %v810_v6  ;;  %v742_v9 = vld [vmem:[%s236_s26] sm:$0xff]  ;;  %v744_v10 = vld [vmem:[%s236_s26 + $0x10] sm:$0xff]  ;;  %v743_v13 = vld [vmem:[%s236_s26 + $0x8] sm:$0xff] }
  0x11   : > { %268 = vst.msk [vmem:[#allocation2 + $0x18] sm:$0xff] %vm264_vm2, %v810_v6  ;;  %v746_v11 = vld [vmem:[%s236_s26 + $0x20] sm:$0xff]  ;;  %v748_v12 = vld [vmem:[%s236_s26 + $0x30] sm:$0xff]  ;;  %v745_v14 = vld [vmem:[%s236_s26 + $0x18] sm:$0xff] }
  0x12   : > { %406 = vmatpush.bf16.msra.mxu0 %v398_v7  ;;  %752 = vmatpush.bf16.msra.mxu1 %v398_v7  ;;  %269 = vst.msk [vmem:[#allocation2 + $0x20] sm:$0xff] %vm264_vm2, %v810_v6  ;;  %v747_v15 = vld [vmem:[%s236_s26 + $0x28] sm:$0xff]  ;;  %v749_v16 = vld [vmem:[%s236_s26 + $0x38] sm:$0xff] }
  0x13   : > { %753 = vmatpush.bf16.msra.mxu2 %v398_v7  ;;  %754 = vmatpush.bf16.msra.mxu3 %v398_v7  ;;  %270 = vst.msk [vmem:[#allocation2 + $0x28] sm:$0xff] %vm264_vm2, %v810_v6 }
  0x14   : > { %271 = vst.msk [vmem:[#allocation2 + $0x30] sm:$0xff] %vm264_vm2, %v810_v6 }
  0x15   : > { %272 = vst.msk [vmem:[#allocation2 + $0x38] sm:$0xff] %vm264_vm2, %v810_v6  ;;  %v281_v17 = vld [vmem:[#allocation2] sm:$0xff] }
  0x16   : > { %407 = vmatpush.bf16.msra.mxu0 %v750_v8  ;;  %755 = vmatpush.bf16.msra.mxu1 %v750_v8  ;;  %273 = vst.msk [vmem:[#allocation2 + $0x40] sm:$0xff] %vm264_vm2, %v810_v6  ;;  %v282_v25 = vld [vmem:[#allocation2 + $0x8] sm:$0xff] }
  0x17   : > { %756 = vmatpush.bf16.msra.mxu2 %v750_v8  ;;  %757 = vmatpush.bf16.msra.mxu3 %v750_v8  ;;  %274 = vst.msk [vmem:[#allocation2 + $0x48] sm:$0xff] %vm264_vm2, %v810_v6  ;;  %v283_v44 = vld [vmem:[#allocation2 + $0x10] sm:$0xff] }
  0x18   : > { %275 = vst.msk [vmem:[#allocation2 + $0x50] sm:$0xff] %vm264_vm2, %v810_v6 }
  0x19   : > { %732 = vmatmul.msk.bf16.vlgmr.msra.gmra.mxu0 %vm368_vm3, %v742_v9  ;;  %734 = vmatmul.msk.bf16.vlgmr.msra.gmra.mxu1 %vm368_vm3, %v744_v10  ;;  %276 = vst.msk [vmem:[#allocation2 + $0x58] sm:$0xff] %vm264_vm2, %v810_v6  ;;  %v285_v18 = vld [vmem:[#allocation2 + $0x20] sm:$0xff]  ;;  %v284_v10 = vld [vmem:[#allocation2 + $0x18] sm:$0xff] }
  0x1a   : > { %736 = vmatmul.msk.bf16.vlgmr.msra.gmra.mxu2 %vm368_vm3, %v746_v11  ;;  %738 = vmatmul.msk.bf16.vlgmr.msra.gmra.mxu3 %vm368_vm3, %v748_v12  ;;  %277 = vst.msk [vmem:[#allocation2 + $0x60] sm:$0xff] %vm264_vm2, %v810_v6  ;;  %v286_v26 = vld [vmem:[#allocation2 + $0x28] sm:$0xff] }
  0x1b   : > { %278 = vst.msk [vmem:[#allocation2 + $0x68] sm:$0xff] %vm264_vm2, %v810_v6  ;;  %v287_v48 = vld [vmem:[#allocation2 + $0x30] sm:$0xff] }
  0x1c   : > { %279 = vst.msk [vmem:[#allocation2 + $0x70] sm:$0xff] %vm264_vm2, %v810_v6 }
  0x1d   : > { %280 = vst.msk [vmem:[#allocation2 + $0x78] sm:$0xff] %vm264_vm2, %v810_v6  ;;  %v289_v23 = vld [vmem:[#allocation2 + $0x40] sm:$0xff] }
  0x1e   : > { %v290_v41 = vld [vmem:[#allocation2 + $0x48] sm:$0xff] }
  0x1f   : > { %v291_v2 = vld [vmem:[#allocation2 + $0x50] sm:$0xff] }
  0x21   : > { %v293_v24 = vld [vmem:[#allocation2 + $0x60] sm:$0xff] }
  0x22   : > { %v294_v42 = vld [vmem:[#allocation2 + $0x68] sm:$0xff] }
  0x23   : > { %v295_v5 = vld [vmem:[#allocation2 + $0x70] sm:$0xff] }
  0x29   : > { %733 = vmatmul.msk.bf16.gmra.mxu0 %vm368_vm3, %v743_v13  ;;  %735 = vmatmul.msk.bf16.gmra.mxu1 %vm368_vm3, %v745_v14  ;;  %v288_v14 = vld [vmem:[#allocation2 + $0x38] sm:$0xff] }
  0x2a   : > { %737 = vmatmul.msk.bf16.gmra.mxu2 %vm368_vm3, %v747_v15  ;;  %739 = vmatmul.msk.bf16.gmra.mxu3 %vm368_vm3, %v749_v16 }
  0x96   : > { %v409_v19 = vpop.f32.mrf.mxu0  ;;  %v419_v20 = vpop.f32.mrf.mxu1 }
  0x97   : > { %v449_v21 = vadd.f32 %v409_v19, %v281_v17  ;;  %v453_v22 = vadd.f32 %v419_v20, %v285_v18 }
  0x99   : > { %466 = vst.msk [vmem:[#allocation2] sm:$0xff] %vm264_vm2, %v449_v21 }
  0x9a   : > { %470 = vst.msk [vmem:[#allocation2 + $0x20] sm:$0xff] %vm264_vm2, %v453_v22 }
  0x9d   : > { %v429_v28 = vpop.f32.mrf.mxu2  ;;  %v439_v29 = vpop.f32.mrf.mxu3 }
  0x9e   : > { %v457_v30 = vadd.f32 %v429_v28, %v289_v23  ;;  %v461_v31 = vadd.f32 %v439_v29, %v293_v24  ;;  %v411_v32 = vpop.f32.mrf.mxu0  ;;  %v421_v33 = vpop.f32.mrf.mxu1 }
  0x9f   : > { %v450_v34 = vadd.f32 %v411_v32, %v282_v25  ;;  %v454_v35 = vadd.f32 %v421_v33, %v286_v26 }
  0xa0   : > { %v485_v36 = vld [vmem:[#allocation2] sm:$0xff]  ;;  %474 = vst.msk [vmem:[#allocation2 + $0x40] sm:$0xff] %vm264_vm2, %v457_v30 }
  0xa1   : > { %v505_v37 = vadd.f32 %v895_v27, %v485_v36  ;;  %v489_v38 = vld [vmem:[#allocation2 + $0x20] sm:$0xff]  ;;  %478 = vst.msk [vmem:[#allocation2 + $0x60] sm:$0xff] %vm264_vm2, %v461_v31  ;;  %v292_v31 = vld [vmem:[#allocation2 + $0x58] sm:$0xff] }
  0xa2   : > { %v509_v39 = vadd.f32 %v895_v27, %v489_v38  ;;  %467 = vst.msk [vmem:[#allocation2 + $0x8] sm:$0xff] %vm264_vm2, %v450_v34 }
  0xa3   : > { %v521_v40 = vmax.f32 %v505_v37, 0.0  ;;  %471 = vst.msk [vmem:[#allocation2 + $0x28] sm:$0xff] %vm264_vm2, %v454_v35  ;;  %v296_v35 = vld [vmem:[#allocation2 + $0x78] sm:$0xff] }
  0xa4   : > { %v525_v43 = vmax.f32 %v509_v39, 0.0 }
  0xa5   : > { %v537_v45 = vpack.c.bf16 %v521_v40, %v521_v40  ;;  %v431_v46 = vpop.f32.mrf.mxu2  ;;  %v441_v47 = vpop.f32.mrf.mxu3 }
  0xa6   : > { %v541_v49 = vpack.c.bf16 %v525_v43, %v525_v43  ;;  %v458_v50 = vadd.f32 %v431_v46, %v290_v41  ;;  %v462_v51 = vadd.f32 %v441_v47, %v294_v42  ;;  %v414_v52 = vpop.f32.mrf.mxu0  ;;  %v424_v53 = vpop.f32.mrf.mxu1 }
  0xa7   : > { %554 = vst.msk [vmem:[%s908_s4] sm:$0xf] %vm553_vm4, %v537_v45  ;;  %v493_v54 = vld [vmem:[#allocation2 + $0x40] sm:$0xff]  ;;  %v451_v55 = vadd.f32 %v414_v52, %v283_v44  ;;  %v455_v58 = vadd.f32 %v424_v53, %v287_v48 }
  0xa8   : > { %558 = vst.msk [vmem:[%s908_s4 + $0x10] sm:$0xf] %vm553_vm4, %v541_v49  ;;  %v513_v56 = vadd.f32 %v895_v27, %v493_v54  ;;  %v497_v57 = vld [vmem:[#allocation2 + $0x60] sm:$0xff] }
  0xa9   : > { %v517_v59 = vadd.f32 %v895_v27, %v497_v57  ;;  %v486_v60 = vld [vmem:[#allocation2 + $0x8] sm:$0xff]  ;;  %475 = vst.msk [vmem:[#allocation2 + $0x48] sm:$0xff] %vm264_vm2, %v458_v50 }
  0xaa   : > { %v529_v61 = vmax.f32 %v513_v56, 0.0  ;;  %v506_v62 = vadd.f32 %v895_v27, %v486_v60  ;;  %v490_v63 = vld [vmem:[#allocation2 + $0x28] sm:$0xff]  ;;  %479 = vst.msk [vmem:[#allocation2 + $0x68] sm:$0xff] %vm264_vm2, %v462_v51 }
  0xab   : > { %v533_v0 = vmax.f32 %v517_v59, 0.0  ;;  %v510_v1 = vadd.f32 %v895_v27, %v490_v63  ;;  %468 = vst.msk [vmem:[#allocation2 + $0x10] sm:$0xff] %vm264_vm2, %v451_v55 }
  0xac   : > { %v545_v3 = vpack.c.bf16 %v529_v61, %v529_v61  ;;  %v522_v4 = vmax.f32 %v506_v62, 0.0  ;;  %472 = vst.msk [vmem:[#allocation2 + $0x30] sm:$0xff] %vm264_vm2, %v455_v58 }
  0xad   : > { %v549_v6 = vpack.c.bf16 %v533_v0, %v533_v0  ;;  %v526_v7 = vmax.f32 %v510_v1, 0.0  ;;  %v434_v8 = vpop.f32.mrf.mxu2  ;;  %v444_v9 = vpop.f32.mrf.mxu3 }
  0xae   : > { %562 = vst.msk [vmem:[%s908_s4 + $0x20] sm:$0xf] %vm553_vm4, %v545_v3  ;;  %v538_v11 = vpack.c.bf16 %v522_v4, %v522_v4  ;;  %v459_v12 = vadd.f32 %v434_v8, %v291_v2  ;;  %v416_v13 = vpop.f32.mrf.mxu0  ;;  %v426_v15 = vpop.f32.mrf.mxu1  ;;  %v463_v17 = vadd.f32 %v444_v9, %v295_v5 }
  0xaf   : > { %566 = vst.msk [vmem:[%s908_s4 + $0x30] sm:$0xf] %vm553_vm4, %v549_v6  ;;  %v542_v16 = vpack.c.bf16 %v526_v7, %v526_v7  ;;  %v452_v19 = vadd.f32 %v416_v13, %v284_v10  ;;  %v456_v22 = vadd.f32 %v426_v15, %v288_v14 }
  0xb0   : > { %555 = vst.msk [vmem:[%s908_s4 + $0x4] sm:$0xf] %vm553_vm4, %v538_v11  ;;  %v494_v18 = vld [vmem:[#allocation2 + $0x48] sm:$0xff] }
  0xb1   : > { %559 = vst.msk [vmem:[%s908_s4 + $0x14] sm:$0xf] %vm553_vm4, %v542_v16  ;;  %v514_v20 = vadd.f32 %v895_v27, %v494_v18  ;;  %v498_v21 = vld [vmem:[#allocation2 + $0x68] sm:$0xff] }
  0xb2   : > { %v518_v23 = vadd.f32 %v895_v27, %v498_v21  ;;  %v487_v24 = vld [vmem:[#allocation2 + $0x10] sm:$0xff]  ;;  %476 = vst.msk [vmem:[#allocation2 + $0x50] sm:$0xff] %vm264_vm2, %v459_v12 }
  0xb3   : > { %v530_v25 = vmax.f32 %v514_v20, 0.0  ;;  %v507_v26 = vadd.f32 %v895_v27, %v487_v24  ;;  %v491_v28 = vld [vmem:[#allocation2 + $0x30] sm:$0xff]  ;;  %480 = vst.msk [vmem:[#allocation2 + $0x70] sm:$0xff] %vm264_vm2, %v463_v17 }
  0xb4   : > { %v534_v29 = vmax.f32 %v518_v23, 0.0  ;;  %v511_v30 = vadd.f32 %v895_v27, %v491_v28  ;;  %469 = vst.msk [vmem:[#allocation2 + $0x18] sm:$0xff] %vm264_vm2, %v452_v19 }
  0xb5   : > { %v546_v32 = vpack.c.bf16 %v530_v25, %v530_v25  ;;  %v523_v33 = vmax.f32 %v507_v26, 0.0  ;;  %473 = vst.msk [vmem:[#allocation2 + $0x38] sm:$0xff] %vm264_vm2, %v456_v22  ;;  %v436_v34 = vpop.f32.mrf.mxu2  ;;  %v446_v36 = vpop.f32.mrf.mxu3 }
  0xb6   : > { %v550_v37 = vpack.c.bf16 %v534_v29, %v534_v29  ;;  %v527_v38 = vmax.f32 %v511_v30, 0.0  ;;  %v460_v40 = vadd.f32 %v436_v34, %v292_v31  ;;  %v464_v42 = vadd.f32 %v446_v36, %v296_v35 }
  0xb7   : > { %563 = vst.msk [vmem:[%s908_s4 + $0x24] sm:$0xf] %vm553_vm4, %v546_v32  ;;  %v539_v39 = vpack.c.bf16 %v523_v33, %v523_v33 }
  0xb8   : > { %567 = vst.msk [vmem:[%s908_s4 + $0x34] sm:$0xf] %vm553_vm4, %v550_v37  ;;  %v543_v41 = vpack.c.bf16 %v527_v38, %v527_v38 }
  0xb9   : > { %556 = vst.msk [vmem:[%s908_s4 + $0x8] sm:$0xf] %vm553_vm4, %v539_v39  ;;  %v495_v43 = vld [vmem:[#allocation2 + $0x50] sm:$0xff] }
  0xba   : > { %560 = vst.msk [vmem:[%s908_s4 + $0x18] sm:$0xf] %vm553_vm4, %v543_v41  ;;  %v515_v44 = vadd.f32 %v895_v27, %v495_v43  ;;  %v499_v45 = vld [vmem:[#allocation2 + $0x70] sm:$0xff] }
  0xbb   : > { %v519_v46 = vadd.f32 %v895_v27, %v499_v45  ;;  %v488_v47 = vld [vmem:[#allocation2 + $0x18] sm:$0xff]  ;;  %477 = vst.msk [vmem:[#allocation2 + $0x58] sm:$0xff] %vm264_vm2, %v460_v40 }
  0xbc   : > { %v531_v48 = vmax.f32 %v515_v44, 0.0  ;;  %v508_v49 = vadd.f32 %v895_v27, %v488_v47  ;;  %v492_v50 = vld [vmem:[#allocation2 + $0x38] sm:$0xff]  ;;  %481 = vst.msk [vmem:[#allocation2 + $0x78] sm:$0xff] %vm264_vm2, %v464_v42 }
  0xbd   : > { %v535_v51 = vmax.f32 %v519_v46, 0.0  ;;  %v512_v52 = vadd.f32 %v895_v27, %v492_v50 }
  0xbe   : > { %v547_v53 = vpack.c.bf16 %v531_v48, %v531_v48  ;;  %v524_v54 = vmax.f32 %v508_v49, 0.0 }
  0xbf   : > { %v551_v55 = vpack.c.bf16 %v535_v51, %v535_v51  ;;  %v528_v56 = vmax.f32 %v512_v52, 0.0 }
  0xc0   : > { %564 = vst.msk [vmem:[%s908_s4 + $0x28] sm:$0xf] %vm553_vm4, %v547_v53  ;;  %v540_v57 = vpack.c.bf16 %v524_v54, %v524_v54 }
  0xc1   : > { %568 = vst.msk [vmem:[%s908_s4 + $0x38] sm:$0xf] %vm553_vm4, %v551_v55  ;;  %v544_v58 = vpack.c.bf16 %v528_v56, %v528_v56 }
  0xc2   : > { %557 = vst.msk [vmem:[%s908_s4 + $0xc] sm:$0xf] %vm553_vm4, %v540_v57  ;;  %v496_v59 = vld [vmem:[#allocation2 + $0x58] sm:$0xff] }
  0xc3   : > { %561 = vst.msk [vmem:[%s908_s4 + $0x1c] sm:$0xf] %vm553_vm4, %v544_v58  ;;  %v516_v60 = vadd.f32 %v895_v27, %v496_v59  ;;  %v500_v61 = vld [vmem:[#allocation2 + $0x78] sm:$0xff] }
  0xc4   : > { %v520_v62 = vadd.f32 %v895_v27, %v500_v61 }
  0xc5   : > { %v532_v63 = vmax.f32 %v516_v60, 0.0 }
  0xc6   : > { %v536_v0 = vmax.f32 %v520_v62, 0.0 }
  0xc7   : > { %v548_v1 = vpack.c.bf16 %v532_v63, %v532_v63 }
  0xc8   : > { %v552_v2 = vpack.c.bf16 %v536_v0, %v536_v0 }
  0xc9   : > { %565 = vst.msk [vmem:[%s908_s4 + $0x2c] sm:$0xf] %vm553_vm4, %v548_v1 }
  0xca   : > { %569 = vst.msk [vmem:[%s908_s4 + $0x3c] sm:$0xf] %vm553_vm4, %v552_v2 }
  0xcb PF: > { %s13_s14 = sadd.s32 1, %s807_s14   ;;  %s979_s12 = smov %s803_s13 }
  0xcc   : > { %p10_p5 = scmp.ge.s32.totalorder %s13_s14, 6   ;;  %s980_s13 = smov %s982_s15 }
  0xce   :  { %12 = sbr.rel (!%p10_p5) target bundleno = 2 (0x2), region = 76 }

</bundles_post_ra>
